<compile_context>
chip_gen: v7x
topology: tpu7x:2x2x1
jax: 0.10.0
libtpu: 0.0.40
codegen_flags: <defaults>
</compile_context>

<pallas_src>
import math
from functools import reduce
from operator import mul

import jax
import jax.numpy as jnp
from jax import lax
from jax.experimental import pallas as pl
from jax.experimental.pallas import tpu as pltpu


def _round_up(x, m):
    return ((x + m - 1) // m) * m


def _gelu_exact(x):
    # PyTorch nn.GELU() default = exact erf formulation (computed in f32).
    return 0.5 * x * (1.0 + lax.erf(x * (1.0 / math.sqrt(2.0))))


def _make_kernel(chunk, approximate_gelu, compute_dtype):
    if approximate_gelu:
        # tanh-approx GELU -> EUP tanh (frees the VALU slot); deviates slightly
        # from PyTorch's exact-erf default, so it is opt-in.
        act = lambda v: jax.nn.gelu(v, approximate=True)
    else:
        act = _gelu_exact

    def kernel(x_ref, w1_ref, b1_ref, w2_ref, b2_ref, o_ref, acc_ref):
        j = pl.program_id(1)

        @pl.when(j == 0)
        def _():
            acc_ref[...] = jnp.zeros_like(acc_ref)

        # One wide MXU pass per hidden chunk: columns [0:chunk] are the fc11
        # branch, columns [chunk:2*chunk] are the fc12 branch (packed by the
        # wrapper).  Accumulate in f32 on the MXU.
        x = x_ref[...].astype(compute_dtype)                              # (tm, C)
        h = jnp.dot(x, w1_ref[...],
                    preferred_element_type=jnp.float32) + b1_ref[...]     # (tm, 2*chunk) f32
        h1 = h[:, :chunk]                                                 # fc11 branch
        h2 = h[:, chunk:]                                                 # fc12 branch
        # Gating kept in f32 so the same kernel is safe on v5e (no bf16 VPU).
        g = act(h1) * h2                                                  # (tm, chunk) f32
        acc_ref[...] += jnp.dot(g.astype(compute_dtype), w2_ref[...],
                                preferred_element_type=jnp.float32)       # (tm, C_out_p)

        @pl.when(j == pl.num_programs(1) - 1)
        def _():
            o_ref[...] = (acc_ref[...] + b2_ref[...]).astype(o_ref.dtype)

    return kernel


def _vmem_limit_bytes():
    """Per-chip scoped-VMEM limit: 3/4 of physical, capped at 100 MiB."""
    cap = 64 * 1024 * 1024  # conservative default (== v7x per-TC physical VMEM)
    try:  # hardware introspection only -- never hides kernel compile errors
        info = pltpu.get_tpu_info()
        cap = int(getattr(info, "vmem_capacity_bytes", cap)) or cap
    except Exception:
        pass
    return int(min(cap * 3 // 4, 100 * 1024 * 1024))


def _estimate_vmem(tile_rows, c_in, chunk, c_out_p, x_bytes, w_bytes, out_bytes):
    """Rough static estimate of per-step VMEM (double-buffered blocks + scratch)."""
    x_blk = 2 * tile_rows * c_in * x_bytes
    w1_blk = 2 * c_in * (2 * chunk) * w_bytes
    b1_blk = 2 * (2 * chunk) * 4
    w2_blk = 2 * chunk * c_out_p * w_bytes
    b2_blk = 2 * c_out_p * 4
    out_blk = 2 * tile_rows * c_out_p * out_bytes
    acc = tile_rows * c_out_p * 4
    interm = tile_rows * chunk * 16  # h(f32, 2*chunk) + g(f32) + low-precision copies
    return x_blk + w1_blk + b1_blk + w2_blk + b2_blk + out_blk + acc + interm


def mlp_geglu_pallas(x, params, *, tile_rows=512, hid_chunk=512,
                     approximate_gelu=False, compute_dtype=jnp.bfloat16,
                     out_dtype=None):
    """x: (..., C) e.g. (B, D, H, W, C).  params: dict from init_params."""
    w11, b11 = params["w11"], params["b11"]   # (C, hid), (1, hid)
    w12, b12 = params["w12"], params["b12"]   # (C, hid), (1, hid)
    w2, b2 = params["w2"], params["b2"]       # (hid, C_out), (1, C_out)

    orig_shape = x.shape
    c_in = orig_shape[-1]
    n = reduce(mul, orig_shape[:-1], 1)
    hid = w11.shape[1]
    c_out = w2.shape[1]
    out_dtype = out_dtype or x.dtype

    # Lane-dense padding (multiples of 128) + hidden chunking.
    hid128 = _round_up(hid, 128)
    chunk = min(_round_up(hid_chunk, 128), hid128)
    hid_p = _round_up(hid128, chunk)
    n_chunks = hid_p // chunk
    c_out_p = _round_up(c_out, 128)

    def pad2(a, rows, cols):
        return jnp.pad(a, ((0, rows - a.shape[0]), (0, cols - a.shape[1])))

    # Pack fc11/fc12 chunk-interleaved: [w11_c0 | w12_c0 | w11_c1 | w12_c1 | ...]
    # so one BlockSpec window of width 2*chunk carries both branches of chunk j.
    w11p = pad2(w11, c_in, hid_p).reshape(c_in, n_chunks, chunk)
    w12p = pad2(w12, c_in, hid_p).reshape(c_in, n_chunks, chunk)
    w1_packed = jnp.concatenate([w11p, w12p], axis=-1).reshape(
        c_in, n_chunks * 2 * chunk).astype(compute_dtype)
    b11p = pad2(b11, 1, hid_p).reshape(1, n_chunks, chunk)
    b12p = pad2(b12, 1, hid_p).reshape(1, n_chunks, chunk)
    b1_packed = jnp.concatenate([b11p, b12p], axis=-1).reshape(
        1, n_chunks * 2 * chunk).astype(jnp.float32)
    w2p = pad2(w2, hid_p, c_out_p).astype(compute_dtype)     # (hid_p, C_out_p)
    b2p = pad2(b2, 1, c_out_p).astype(jnp.float32)           # (1, C_out_p)

    x2d = x.reshape(n, c_in)

    # Dtype-aware sublane granularity for the row tile (f32->8, bf16->16, 8-bit->32).
    x_bytes = jnp.dtype(x.dtype).itemsize
    w_bytes = jnp.dtype(compute_dtype).itemsize
    out_bytes = jnp.dtype(out_dtype).itemsize
    sub = max(8, 32 // x_bytes)

    tile_rows = max(sub, min(_round_up(tile_rows, sub), _round_up(n, sub)))
    limit = _vmem_limit_bytes()
    # Shrink the row tile until the static VMEM estimate fits with headroom.
    while (tile_rows > sub and
           _estimate_vmem(tile_rows, c_in, chunk, c_out_p,
                          x_bytes, w_bytes, out_bytes) > 0.8 * limit):
        tile_rows = max(sub, _round_up(tile_rows // 2, sub))

    flops = 2 * n * c_in * (2 * hid_p) + 2 * n * hid_p * c_out_p
    transcendentals = n * hid_p
    bytes_accessed = (n * c_in * x_bytes
                      + w1_packed.size * w_bytes + w2p.size * w_bytes
                      + b1_packed.size * 4 + b2p.size * 4
                      + n * c_out_p * out_bytes)

    out2d = pl.pallas_call(
        _make_kernel(chunk, approximate_gelu, compute_dtype),
        out_shape=jax.ShapeDtypeStruct((n, c_out_p), out_dtype),
        grid_spec=pltpu.PrefetchScalarGridSpec(
            num_scalar_prefetch=0,
            grid=(pl.cdiv(n, tile_rows), n_chunks),          # reduction axis LAST
            in_specs=[
                pl.BlockSpec((tile_rows, c_in), lambda i, j: (i, 0)),      # x rows
                pl.BlockSpec((c_in, 2 * chunk), lambda i, j: (0, j)),      # [w11|w12] chunk
                pl.BlockSpec((1, 2 * chunk), lambda i, j: (0, j)),         # [b11|b12] chunk
                pl.BlockSpec((chunk, c_out_p), lambda i, j: (j, 0)),       # w2 chunk
                pl.BlockSpec((1, c_out_p), lambda i, j: (0, 0)),           # b2
            ],
            out_specs=pl.BlockSpec((tile_rows, c_out_p), lambda i, j: (i, 0)),
            scratch_shapes=[pltpu.VMEM((tile_rows, c_out_p), jnp.float32)],
        ),
        compiler_params=pltpu.CompilerParams(
            dimension_semantics=("parallel", "arbitrary"),
            vmem_limit_bytes=limit,
        ),
        cost_estimate=pl.CostEstimate(flops=flops,
                                      transcendentals=transcendentals,
                                      bytes_accessed=bytes_accessed),
    )(x2d, w1_packed, b1_packed, w2p, b2p)

    if c_out_p != c_out:
        out2d = out2d[:, :c_out]
    return out2d.reshape(orig_shape[:-1] + (c_out,))


def init_params(key, in_features, hidden_features=None, out_features=None,
                dtype=jnp.float32):
    """Deterministic synthetic init mirroring nn.Linear shapes.
    Stored pre-transposed: w* is (in, out) so the kernel does x @ w."""
    out_features = out_features or in_features
    hidden_features = hidden_features or in_features
    k11, k12, k2, kb11, kb12, kb2 = jax.random.split(key, 6)

    def lin(kw, kb, fan_in, fan_out):
        bound = 1.0 / math.sqrt(fan_in)
        w = jax.random.uniform(kw, (fan_in, fan_out), dtype, -bound, bound)
        b = jax.random.uniform(kb, (1, fan_out), dtype, -bound, bound)
        return w, b

    w11, b11 = lin(k11, kb11, in_features, hidden_features)
    w12, b12 = lin(k12, kb12, in_features, hidden_features)
    w2, b2 = lin(k2, kb2, hidden_features, out_features)
    return {"w11": w11, "b11": b11, "w12": w12, "b12": b12, "w2": w2, "b2": b2}


def mlp_geglu_ref(x, params):
    """Pure-JAX f32 reference for correctness checking."""
    h1 = x @ params["w11"] + params["b11"][0]
    h2 = x @ params["w12"] + params["b12"][0]
    g = _gelu_exact(h1) * h2
    return g @ params["w2"] + params["b2"][0]


if __name__ == "__main__":
    key = jax.random.PRNGKey(0)
    kx, kp = jax.random.split(key)

    # Small shapes consistent with the module's (B, D, H, W, C) contract.
    B, D, H, W, C = 2, 2, 4, 4, 32
    x = jax.random.normal(kx, (B, D, H, W, C), dtype=jnp.float32)

    # TODO(synk): dropout (p=0.0 in the reference forward) is an identity and is
    # intentionally not implemented in the kernel.

    # Test 1: single hidden chunk, single row tile.
    params = init_params(kp, in_features=C, hidden_features=64, out_features=C)
    out = jax.block_until_ready(mlp_geglu_pallas(x, params))
    ref = mlp_geglu_ref(x, params)
    assert out.shape == (B, D, H, W, C), out.shape
    err = float(jnp.max(jnp.abs(out - ref)))
    assert jnp.allclose(out, ref, atol=5e-2, rtol=5e-2), err  # bf16 matmuls, f32 acc

    # Test 2: exercise the hidden-chunk accumulator (2 chunks) and >1 row tile.
    params2 = init_params(jax.random.fold_in(kp, 1),
                          in_features=C, hidden_features=256, out_features=C)
    out2 = jax.block_until_ready(
        mlp_geglu_pallas(x, params2, tile_rows=32, hid_chunk=128))
    ref2 = mlp_geglu_ref(x, params2)
    assert out2.shape == (B, D, H, W, C), out2.shape
    err2 = float(jnp.max(jnp.abs(out2 - ref2)))
    assert jnp.allclose(out2, ref2, atol=5e-2, rtol=5e-2), err2

    print("KERNEL_OK")
</pallas_src>

<mosaic_0001>
module attributes {stable_mosaic.version = 11 : i64} {
  func.func @kernel(%arg0: i32, %arg1: i32, %arg2: memref<64x32xf32, #tpu.memory_space<vmem>>, %arg3: memref<32x256xbf16, #tpu.memory_space<vmem>>, %arg4: memref<1x256xf32, #tpu.memory_space<vmem>>, %arg5: memref<128x128xbf16, #tpu.memory_space<vmem>>, %arg6: memref<1x128xf32, #tpu.memory_space<vmem>>, %arg7: memref<64x128xf32, #tpu.memory_space<vmem>>, %arg8: memref<64x128xf32, #tpu.memory_space<vmem>>) attributes {dimension_semantics = [#tpu.dimension_semantics<parallel>, #tpu.dimension_semantics<arbitrary>], iteration_bounds = array<i64: 1, 1>, scalar_prefetch = 0 : i64, scratch_operands = 1 : i64, tpu.core_type = #tpu.core_type<tc>, window_params = [{transform_indices = @transform_0, window_bounds = array<i64: 64, 32>}, {transform_indices = @transform_1, window_bounds = array<i64: 32, 256>}, {transform_indices = @transform_2, window_bounds = array<i64: 1, 256>}, {transform_indices = @transform_3, window_bounds = array<i64: 128, 128>}, {pipeline_mode = #tpu.pipeline_mode<synchronous>, transform_indices = @transform_4, window_bounds = array<i64: 1, 128>}, {transform_indices = @transform_5, window_bounds = array<i64: 64, 128>}]} {
    %c0_i32 = arith.constant 0 : i32
    %0 = arith.cmpi eq, %arg1, %c0_i32 : i32
    %1 = arith.extui %0 : i1 to i32
    %c0_i32_0 = arith.constant 0 : i32
    %2 = arith.cmpi ne, %1, %c0_i32_0 : i32
    scf.if %2 {
      %cst_18 = arith.constant 0.000000e+00 : f32
      %30 = vector.broadcast %cst_18 : f32 to vector<64x128xf32>
      %c0_19 = arith.constant 0 : index
      %c0_20 = arith.constant 0 : index
      %31 = vector.load %arg8[%c0_19, %c0_20] : memref<64x128xf32, #tpu.memory_space<vmem>>, vector<64x128xf32>
      tpu.vector_store %arg8[%c0_19, %c0_20], %30 {strides = array<i32>} : memref<64x128xf32, #tpu.memory_space<vmem>>, vector<64x128xf32>,
    } else {
    }
    %c0 = arith.constant 0 : index
    %c0_1 = arith.constant 0 : index
    %3 = vector.load %arg2[%c0, %c0_1] : memref<64x32xf32, #tpu.memory_space<vmem>>, vector<64x32xf32>
    %4 = arith.truncf %3 : vector<64x32xf32> to vector<64x32xbf16>
    %c0_2 = arith.constant 0 : index
    %c0_3 = arith.constant 0 : index
    %5 = vector.load %arg3[%c0_2, %c0_3] : memref<32x256xbf16, #tpu.memory_space<vmem>>, vector<32x256xbf16>
    %cst = arith.constant dense<0.000000e+00> : vector<64x256xf32>
    %6 = tpu.matmul %4, %5, %cst {dimension_numbers = #tpu.dot_dimension_numbers<[1], [0], [0], [1], [0, 0, 1, 1], [], []>} : vector<64x32xbf16>, vector<32x256xbf16>, vector<64x256xf32> -> vector<64x256xf32>
    %c0_4 = arith.constant 0 : index
    %c0_5 = arith.constant 0 : index
    %7 = vector.load %arg4[%c0_4, %c0_5] : memref<1x256xf32, #tpu.memory_space<vmem>>, vector<1x256xf32>
    %8 = vector.broadcast %7 : vector<1x256xf32> to vector<64x256xf32>
    %9 = arith.addf %6, %8 : vector<64x256xf32>
    %10 = vector.extract_strided_slice %9 {offsets = [0, 0], sizes = [64, 128], strides = [1, 1]} : vector<64x256xf32> to vector<64x128xf32>
    %11 = vector.extract_strided_slice %9 {offsets = [0, 128], sizes = [64, 128], strides = [1, 1]} : vector<64x256xf32> to vector<64x128xf32>
    %cst_6 = arith.constant 5.000000e-01 : f32
    %12 = vector.broadcast %cst_6 : f32 to vector<64x128xf32>
    %13 = arith.mulf %12, %10 : vector<64x128xf32>
    %cst_7 = arith.constant 0.707106769 : f32
    %14 = vector.broadcast %cst_7 : f32 to vector<64x128xf32>
    %15 = arith.mulf %10, %14 : vector<64x128xf32>
    %16 = math.erf %15 : vector<64x128xf32>
    %cst_8 = arith.constant 1.000000e+00 : f32
    %17 = vector.broadcast %cst_8 : f32 to vector<64x128xf32>
    %18 = arith.addf %17, %16 : vector<64x128xf32>
    %19 = arith.mulf %13, %18 : vector<64x128xf32>
    %20 = arith.mulf %19, %11 : vector<64x128xf32>
    %c0_9 = arith.constant 0 : index
    %c0_10 = arith.constant 0 : index
    %21 = vector.load %arg8[%c0_9, %c0_10] : memref<64x128xf32, #tpu.memory_space<vmem>>, vector<64x128xf32>
    %22 = arith.truncf %20 : vector<64x128xf32> to vector<64x128xbf16>
    %c0_11 = arith.constant 0 : index
    %c0_12 = arith.constant 0 : index
    %23 = vector.load %arg5[%c0_11, %c0_12] : memref<128x128xbf16, #tpu.memory_space<vmem>>, vector<128x128xbf16>
    %cst_13 = arith.constant dense<0.000000e+00> : vector<64x128xf32>
    %24 = tpu.matmul %22, %23, %cst_13 {dimension_numbers = #tpu.dot_dimension_numbers<[1], [0], [0], [1], [0, 0, 1, 1], [], []>} : vector<64x128xbf16>, vector<128x128xbf16>, vector<64x128xf32> -> vector<64x128xf32>
    %25 = arith.addf %21, %24 : vector<64x128xf32>
    %c0_14 = arith.constant 0 : index
    %c0_15 = arith.constant 0 : index
    %26 = vector.load %arg8[%c0_14, %c0_15] : memref<64x128xf32, #tpu.memory_space<vmem>>, vector<64x128xf32>
    tpu.vector_store %arg8[%c0_14, %c0_15], %25 {strides = array<i32>} : memref<64x128xf32, #tpu.memory_space<vmem>>, vector<64x128xf32>,
    %c0_i32_16 = arith.constant 0 : i32
    %27 = arith.cmpi eq, %arg1, %c0_i32_16 : i32
    %28 = arith.extui %27 : i1 to i32
    %c0_i32_17 = arith.constant 0 : i32
    %29 = arith.cmpi ne, %28, %c0_i32_17 : i32
    scf.if %29 {
      %c0_18 = arith.constant 0 : index
      %c0_19 = arith.constant 0 : index
      %30 = vector.load %arg8[%c0_18, %c0_19] : memref<64x128xf32, #tpu.memory_space<vmem>>, vector<64x128xf32>
      %c0_20 = arith.constant 0 : index
      %c0_21 = arith.constant 0 : index
      %31 = vector.load %arg6[%c0_20, %c0_21] : memref<1x128xf32, #tpu.memory_space<vmem>>, vector<1x128xf32>
      %32 = vector.broadcast %31 : vector<1x128xf32> to vector<64x128xf32>
      %33 = arith.addf %30, %32 : vector<64x128xf32>
      %c0_22 = arith.constant 0 : index
      %c0_23 = arith.constant 0 : index
      %34 = vector.load %arg7[%c0_22, %c0_23] : memref<64x128xf32, #tpu.memory_space<vmem>>, vector<64x128xf32>
      tpu.vector_store %arg7[%c0_22, %c0_23], %33 {strides = array<i32>} : memref<64x128xf32, #tpu.memory_space<vmem>>, vector<64x128xf32>,
    } else {
    }
    return
  }
  func.func @transform_0(%arg0: i32, %arg1: i32) -> (i32, i32) {
    %c0_i32 = arith.constant 0 : i32
    %c0_i32_0 = arith.constant 0 : i32
    return %arg0, %c0_i32 : i32, i32
  }
  func.func @transform_1(%arg0: i32, %arg1: i32) -> (i32, i32) {
    %c0_i32 = arith.constant 0 : i32
    %c0_i32_0 = arith.constant 0 : i32
    return %c0_i32, %arg1 : i32, i32
  }
  func.func @transform_2(%arg0: i32, %arg1: i32) -> (i32, i32) {
    %c0_i32 = arith.constant 0 : i32
    %c0_i32_0 = arith.constant 0 : i32
    return %c0_i32, %arg1 : i32, i32
  }
  func.func @transform_3(%arg0: i32, %arg1: i32) -> (i32, i32) {
    %c0_i32 = arith.constant 0 : i32
    %c0_i32_0 = arith.constant 0 : i32
    return %arg1, %c0_i32 : i32, i32
  }
  func.func @transform_4(%arg0: i32, %arg1: i32) -> (i32, i32) {
    %c0_i32 = arith.constant 0 : i32
    %c0_i32_0 = arith.constant 0 : i32
    %c0_i32_1 = arith.constant 0 : i32
    return %c0_i32, %c0_i32_0 : i32, i32
  }
  func.func @transform_5(%arg0: i32, %arg1: i32) -> (i32, i32) {
    %c0_i32 = arith.constant 0 : i32
    %c0_i32_0 = arith.constant 0 : i32
    return %arg0, %c0_i32 : i32, i32
  }
}

</mosaic_0001>

<bundles_post_ra>
// kernel: tpu_custom_call.1
= control target key start
LH: loop header
LB: loop body
LE: loop exit
PB: predicated region body
PF: predicated region fallthrough
CT: control target
= control target key end

     0   :  { %v534_v2 = vmov 0   ;;  %vm82_vm0 = vcmask 261120   ;;  %s660_s0 = inlined_call_operand.vmem [shape: f32[64,32], index: 0, kind: input, shape index: {}]   ;;  %s661_s1 = inlined_call_operand.vmem [shape: bf16[32,256], index: 1, kind: input, shape index: {}]   ;;  %s662_s2 = inlined_call_operand.vmem [shape: f32[1,256], index: 2, kind: input, shape index: {}]   ;;  %s663_s3 = inlined_call_operand.vmem [shape: bf16[128,128], index: 3, kind: input, shape index: {}]   ;;  %s664_s4 = inlined_call_operand.vmem [shape: f32[1,128], index: 4, kind: input, shape index: {}]   ;;  %s665_s5 = inlined_call_operand.hbm [shape: f32[64,128], index: 5, kind: output, shape index: {}]  }
   0x1   :  { %v480_v0 = vld [vmem:[%s661_s1 + $0x4] ss:$8 sps:$4 sm:$0xff]   ;;  %v482_v1 = vld [vmem:[%s661_s1] ss:$8 sps:$4 sm:$0xff]   ;;  %127 = vmatprep.mubr.bf16.mxu0 %v534_v2  ;;  %v483_v3 = vld [vmem:[%s661_s1 + $0x14] ss:$8 sps:$4 sm:$0xff]  }
   0x2   :  { %95 = vmatprep.subr.bf16.mxu0 %v480_v0  ;;  %v485_v4 = vld [vmem:[%s661_s1 + $0x10] ss:$8 sps:$4 sm:$0xff]   ;;  %v34_v5 = vld [vmem:[%s660_s0] sm:$0xff]  ;;  %v35_v6 = vld [vmem:[%s660_s0 + $0x8] sm:$0xff] }
   0x3   :  { %96 = vmatpush1.bf16.msra.mxu0 %v482_v1  ;;  %v42_v7 = vpack.c.bf16 %v35_v6, %v34_v5  ;;  %v36_v8 = vld [vmem:[%s660_s0 + $0x10] sm:$0xff]  ;;  %v37_v9 = vld [vmem:[%s660_s0 + $0x18] sm:$0xff] }
   0x4   :  { %97 = vmatprep.subr.bf16.mxu0 %v483_v3 }
   0x7   :  { %98 = vmatpush1.bf16.msra.mxu0 %v485_v4 }
   0xa   :  { %427 = vmatmul.mubr.msk.bf16.vlgmr.msra.gmra.mrb[0].mxu0 %vm82_vm0, %v42_v7 }
   0xb   :  { %137 = vmatprep.mubr.bf16.mxu0 %v534_v2 }
   0xc   :  { %10 = vsyncpa [#allocation4], 0  ;;  %v43_v10 = vpack.c.bf16 %v37_v9, %v36_v8  ;;  %v38_v11 = vld [vmem:[%s660_s0 + $0x20] sm:$0xff]  ;;  %v39_v12 = vld [vmem:[%s660_s0 + $0x28] sm:$0xff]  ;;  %v52_v25 = vlaneseq  ;;  %s535_s7 = smov [#allocation3]  }
   0xd   :  { %v44_v13 = vpack.c.bf16 %v39_v12, %v38_v11  ;;  %v40_v14 = vld [vmem:[%s660_s0 + $0x30] sm:$0xff]  ;;  %v41_v15 = vld [vmem:[%s660_s0 + $0x38] sm:$0xff]  ;;  %v486_v17 = vld [vmem:[%s663_s3] sm:$0xff]   ;;  %s412_s8 = sshll.u32 %s535_s7, 4  ;;  %s413_s8 = int_to_ptr.vmem [resolvable:$true] %s412_s8 }
   0xe   :  { %v45_v16 = vpack.c.bf16 %v41_v15, %v40_v14  ;;  %452 = vmatprep.subr.bf16.mxu1 %v486_v17  ;;  %v487_v18 = vld [vmem:[%s663_s3 + $0x8] sm:$0xff]   ;;  %v488_v19 = vld [vmem:[%s663_s3 + $0x10] sm:$0xff]   ;;  %v489_v20 = vld [vmem:[%s663_s3 + $0x18] sm:$0xff]   ;;  %v53_v26 = vshrl.u32 %v52_v25, 7  ;;  %p515_p1 = scmp.lt.s32.totalorder %s413_s8, %s413_s8 }
   0xf   :  { %453 = vmatpush3.bf16.msra.mxu1 %v486_v17  ;;  %v490_v21 = vld [vmem:[%s663_s3 + $0x20] sm:$0xff]   ;;  %v491_v22 = vld [vmem:[%s663_s3 + $0x28] sm:$0xff]   ;;  %v492_v23 = vld [vmem:[%s663_s3 + $0x30] sm:$0xff]  }
  0x10   :  { %454 = vmatprep.subr.bf16.mxu1 %v487_v18  ;;  %v493_v24 = vld [vmem:[%s663_s3 + $0x38] sm:$0xff]   ;;  %v54_v27 = vsub.s32 0, %v53_v26  ;;  %v50_v28 = vld [vmem:[%s662_s2] sm:$0x3]  ;;  %v58_v41 = vsub.s32 1, %v53_v26 }
  0x12   :  { %428 = vmatmul.mubr.msk.bf16.gmra.mrb[4].mxu0 %vm82_vm0, %v43_v10  ;;  %v55_v29 = vrot.slane %v50_v28, %v54_v27  ;;  %v635_v47 = vrot.slane %v50_v28, %v58_v41 }
  0x13   :  { %147 = vmatprep.mubr.bf16.mxu0 %v534_v2  ;;  %455 = vmatpush3.bf16.msra.mxu1 %v487_v18 }
  0x14   :  { %456 = vmatprep.subr.bf16.mxu1 %v488_v19 }
  0x17   :  { %457 = vmatpush3.bf16.msra.mxu1 %v488_v19 }
  0x18   :  { %458 = vmatprep.subr.bf16.mxu1 %v489_v20 }
  0x1a   :  { %429 = vmatmul.mubr.msk.bf16.gmra.mrb[8].mxu0 %vm82_vm0, %v44_v13 }
  0x1b   :  { %157 = vmatprep.mubr.bf16.mxu0 %v534_v2  ;;  %459 = vmatpush3.bf16.msra.mxu1 %v489_v20 }
  0x1c   :  { %460 = vmatprep.subr.bf16.mxu1 %v490_v21 }
  0x1f   :  { %461 = vmatpush3.bf16.msra.mxu1 %v490_v21 }
  0x20   :  { %462 = vmatprep.subr.bf16.mxu1 %v491_v22 }
  0x22   :  { %430 = vmatmul.mubr.msk.bf16.gmra.mrb[12].mxu0 %vm82_vm0, %v45_v16 }
  0x23   :  { %463 = vmatpush3.bf16.msra.mxu1 %v491_v22 }
  0x24   :  { %464 = vmatprep.subr.bf16.mxu1 %v492_v23 }
  0x27   :  { %465 = vmatpush3.bf16.msra.mxu1 %v492_v23 }
  0x28   :  { %466 = vmatprep.subr.bf16.mxu1 %v493_v24 }
  0x2b   :  { %467 = vmatpush3.bf16.msra.mxu1 %v493_v24 }
  0xdd   :  { %v129_v30 = vpop.f32.mrb[0].mxu0 }
  0xde   :  { %v130_v31 = vadd.f32 %v129_v30, %v55_v29  ;;  %v131_v32 = vpop.f32.mrb[1].mxu0 }
  0xdf   :  { %v133_v33 = vpop.f32.mrb[2].mxu0  ;;  %v132_v55 = vadd.f32 %v131_v32, %v635_v47 }
  0xe0   :  { %v176_v34 = vmul.f32 0.70710677, %v130_v31  ;;  %v134_v35 = vadd.f32 %v133_v33, %v55_v29  ;;  %v135_v36 = vpop.f32.mrb[3].mxu0  ;;  %v168_v49 = vmul.f32 0.5, %v130_v31 }
  0xe1   :  { %v136_v63 = vadd.f32 %v135_v36, %v635_v47 }
  0xe2   :  { %494 = verf.f32 %v176_v34  ;;  %v177_v37 = vmul.f32 0.70710677, %v134_v35  ;;  %v169_v56 = vmul.f32 0.5, %v134_v35 }
  0xe4   :  { %496 = verf.f32 %v177_v37 }
  0xe5   :  { %v139_v38 = vpop.f32.mrb[4].mxu0 }
  0xe6   :  { %v140_v39 = vadd.f32 %v139_v38, %v55_v29  ;;  %v141_v40 = vpop.f32.mrb[5].mxu0 }
  0xe7   :  { %v143_v42 = vpop.f32.mrb[6].mxu0  ;;  %v142_v12 = vadd.f32 %v141_v40, %v635_v47 }
  0xe8   :  { %v178_v43 = vmul.f32 0.70710677, %v140_v39  ;;  %v144_v44 = vadd.f32 %v143_v42, %v55_v29  ;;  %v145_v45 = vpop.f32.mrb[7].mxu0  ;;  %v170_v5 = vmul.f32 0.5, %v140_v39 }
  0xe9   :  { %v146_v21 = vadd.f32 %v145_v45, %v635_v47 }
  0xea   :  { %498 = verf.f32 %v178_v43  ;;  %v179_v46 = vmul.f32 0.70710677, %v144_v44  ;;  %v171_v14 = vmul.f32 0.5, %v144_v44 }
  0xec   :  { %v495_v48 = vpop.eup %494  ;;  %500 = verf.f32 %v179_v46 }
  0xed   :  { %v192_v50 = vadd.f32 1.0, %v495_v48  ;;  %v149_v51 = vpop.f32.mrb[8].mxu0 }
  0xee   :  { %v497_v52 = vpop.eup %496  ;;  %v150_v53 = vadd.f32 %v149_v51, %v55_v29  ;;  %v151_v54 = vpop.f32.mrb[9].mxu0 }
  0xef   :  { %v193_v57 = vadd.f32 1.0, %v497_v52  ;;  %v153_v58 = vpop.f32.mrb[10].mxu0  ;;  %v200_v59 = vmul.f32 %v192_v50, %v168_v49  ;;  %v152_v31 = vadd.f32 %v151_v54, %v635_v47 }
  0xf0   :  { %v180_v60 = vmul.f32 0.70710677, %v150_v53  ;;  %v154_v61 = vadd.f32 %v153_v58, %v55_v29  ;;  %v155_v62 = vpop.f32.mrb[11].mxu0  ;;  %v172_v26 = vmul.f32 0.5, %v150_v53  ;;  %v439_v53 = vld [vmem:[%s664_s4] ss:$0 sm:$0xff] }
  0xf1   :  { %v201_v0 = vmul.f32 %v193_v57, %v169_v56  ;;  %v208_v1 = vmul.f32 %v200_v59, %v132_v55  ;;  %v156_v35 = vadd.f32 %v155_v62, %v635_v47  ;;  %s510_s4 = scalar_lea.vmem %s413_s8, 1024 }
  0xf2   :  { %502 = verf.f32 %v180_v60  ;;  %v181_v2 = vmul.f32 0.70710677, %v154_v61  ;;  %v173_v33 = vmul.f32 0.5, %v154_v61  ;;  %p511_p0 = scmp.ne.s32.totalorder %s413_s8, %s510_s4  ;;  %p516_p2 = scmp.lt.s32.totalorder %s510_s4, %s510_s4 }
  0xf3   :  { %v209_v3 = vmul.f32 %v201_v0, %v136_v63 }
  0xf4   :  { %v499_v4 = vpop.eup %498  ;;  %504 = verf.f32 %v181_v2  ;;  %p517_p3 = por %p516_p2, %p515_p1 }
  0xf5   :  { %v194_v6 = vadd.f32 1.0, %v499_v4  ;;  %v159_v7 = vpop.f32.mrb[12].mxu0  ;;  %v224_v8 = vpack.c.bf16 %v209_v3, %v208_v1 }
  0xf6   :  { %v501_v9 = vpop.eup %500  ;;  %v160_v10 = vadd.f32 %v159_v7, %v55_v29  ;;  %v161_v11 = vpop.f32.mrb[13].mxu0  ;;  %p518_p4 = pnand %p517_p3, %p511_p0 }
  0xf7   :  { %v202_v13 = vmul.f32 %v194_v6, %v170_v5  ;;  %v195_v15 = vadd.f32 1.0, %v501_v9  ;;  %v163_v16 = vpop.f32.mrb[14].mxu0  ;;  %468 = vmatprep.mubr.bf16.mxu1 %v224_v8  ;;  %v162_v43 = vadd.f32 %v161_v11, %v635_v47 }
  0xf8   :  { %v182_v17 = vmul.f32 0.70710677, %v160_v10  ;;  %v164_v18 = vadd.f32 %v163_v16, %v55_v29  ;;  %v165_v19 = vpop.f32.mrb[15].mxu0  ;;  %v174_v39 = vmul.f32 0.5, %v160_v10 }
  0xf9   :  { %v210_v20 = vmul.f32 %v202_v13, %v142_v12  ;;  %v203_v22 = vmul.f32 %v195_v15, %v171_v14  ;;  %v166_v49 = vadd.f32 %v165_v19, %v635_v47 }
  0xfa   :  { %506 = verf.f32 %v182_v17  ;;  %v183_v23 = vmul.f32 0.70710677, %v164_v18  ;;  %v175_v45 = vmul.f32 0.5, %v164_v18 }
  0xfb   :  { %v211_v24 = vmul.f32 %v203_v22, %v146_v21 }
  0xfc   :  { %v503_v25 = vpop.eup %502  ;;  %508 = verf.f32 %v183_v23 }
  0xfd   :  { %v196_v27 = vadd.f32 1.0, %v503_v25  ;;  %v225_v28 = vpack.c.bf16 %v211_v24, %v210_v20 }
  0xfe   :  { %v505_v30 = vpop.eup %504 }
  0xff   :  { %v204_v32 = vmul.f32 %v196_v27, %v172_v26  ;;  %v197_v34 = vadd.f32 1.0, %v505_v30  ;;  %469 = vmatmul.mubr.bf16.vlgmr.msra.gmra.mrb[0].mxu1 %v225_v28 }
 0x101   :  { %v212_v29 = vmul.f32 %v204_v32, %v152_v31  ;;  %v205_v36 = vmul.f32 %v197_v34, %v173_v33 }
 0x103   :  { %v213_v37 = vmul.f32 %v205_v36, %v156_v35 }
 0x104   :  { %v507_v38 = vpop.eup %506 }
 0x105   :  { %v198_v40 = vadd.f32 1.0, %v507_v38  ;;  %v226_v41 = vpack.c.bf16 %v213_v37, %v212_v29 }
 0x106   :  { %v509_v42 = vpop.eup %508 }
 0x107   :  { %v206_v44 = vmul.f32 %v198_v40, %v174_v39  ;;  %v199_v46 = vadd.f32 1.0, %v509_v42  ;;  %472 = vmatprep.mubr.bf16.mxu1 %v226_v41 }
 0x109   :  { %v214_v48 = vmul.f32 %v206_v44, %v162_v43  ;;  %v207_v50 = vmul.f32 %v199_v46, %v175_v45 }
 0x10b   :  { %v215_v51 = vmul.f32 %v207_v50, %v166_v49 }
 0x10d   :  { %v227_v52 = vpack.c.bf16 %v215_v51, %v214_v48 }
 0x10f   :  { %473 = vmatmul.mubr.bf16.gmra.mrb[4].mxu1 %v227_v52 }
 0x1d2   :  { %v470_v54 = vpop.f32.mrb[0].mxu1 }
 0x1d3   :  { %v393_v55 = vadd.f32 %v470_v54, %v439_v53  ;;  %v326_v56 = vpop.f32.mrb[1].mxu1 }
 0x1d4   :  { %v391_v57 = vadd.f32 %v439_v53, %v326_v56  ;;  %v471_v58 = vpop.f32.mrb[2].mxu1 }
 0x1d5   :  { %401 = vst [vmem:[#allocation3 + $0x10] sm:$0xff] %v393_v55  ;;  %v394_v59 = vadd.f32 %v471_v58, %v439_v53  ;;  %v329_v60 = vpop.f32.mrb[3].mxu1 }
 0x1d6   :  { %399 = vst [vmem:[#allocation3] sm:$0xff] %v391_v57  ;;  %v392_v61 = vadd.f32 %v439_v53, %v329_v60 }
 0x1d7   :  { %402 = vst [vmem:[#allocation3 + $0x18] sm:$0xff] %v394_v59 }
 0x1d8   :  { %400 = vst [vmem:[#allocation3 + $0x8] sm:$0xff] %v392_v61 }
 0x1e2   :  { %v474_v47 = vpop.f32.mrb[4].mxu1 }
 0x1e3   :  { %v397_v62 = vadd.f32 %v474_v47, %v439_v53  ;;  %v342_v63 = vpop.f32.mrb[5].mxu1 }
 0x1e4   :  { %v395_v0 = vadd.f32 %v439_v53, %v342_v63  ;;  %v475_v1 = vpop.f32.mrb[6].mxu1 }
 0x1e5   :  { %405 = vst [vmem:[#allocation3 + $0x30] sm:$0xff] %v397_v62  ;;  %v398_v2 = vadd.f32 %v475_v1, %v439_v53  ;;  %v345_v3 = vpop.f32.mrb[7].mxu1 }
 0x1e6   :  { %403 = vst [vmem:[#allocation3 + $0x20] sm:$0xff] %v395_v0  ;;  %v396_v4 = vadd.f32 %v439_v53, %v345_v3 }
 0x1e7   :  { %406 = vst [vmem:[#allocation3 + $0x38] sm:$0xff] %v398_v2 }
 0x1e8   :  { %404 = vst [vmem:[#allocation3 + $0x28] sm:$0xff] %v396_v4 }
 0x1e9   :  { %521 = shalt.err (!%p518_p4)
}
 0x1ea   :  { %s522_s11 = scalar_lea.hbm %s665_s5, 1024 }
 0x1eb   :  { %p523_p5 = scmp.ne.s32.totalorder %s665_s5, %s522_s11  ;;  %p526_p6 = scmp.lt.u32.totalorder %s522_s11, %s665_s5 }
 0x1ed   :  { %p528_p7 = pnand %p526_p6, %p523_p5 }
 0x1ef   :  { %531 = shalt.err (!%p528_p7)
}
 0x1f0   :  { %s536_s16 = smov 128   ;;  %s537_s17 = smov 8  }
 0x1f1   :  { %418 = dma.vmem_to_hbm [thread:$0]  %s413_s8, 1024, %s665_s5, [#allocation4], %s536_s16, %s536_s16, %s537_s17  }
 0x1f2   :  { %532 = dma.done.wait [#allocation4], 1024  }
 0x1f3   :  { %533 = vsyncadd [#allocation4], 4294966272 }
 0x1f4   :  { %422 = vsyncpa [#allocation4], 1 }

</bundles_post_ra>
